<compile_context>
chip_gen: v7x
topology: tpu7x:2x2x1
jax: 0.10.0
libtpu: 0.0.40
codegen_flags: <defaults>
</compile_context>

<pallas_src>
import functools

import jax
import jax.numpy as jnp
from jax import lax
from jax.experimental import pallas as pl
from jax.experimental.pallas import tpu as pltpu
import numpy as np


# ---------------------------------------------------------------------------
# Kernel: single grid step; unrolled in-kernel loop over T decode steps.
# ---------------------------------------------------------------------------
def attn_decoder_kernel(
    emb_ref,       # (TP, H)        pre-gathered embeddings (rows >= T are zero)
    state0_ref,    # (2, H)         initial (h, c)
    enc_ref,       # (PL, H)        encoder outputs, zero-padded rows >= L
    w_tok_ref,     # (H, PL+128)    [attn.weight.T[:H] | combine.weight.T[:H]] (lane padded)
    w_h_ref,       # (H, PL+4H)     [attn.weight.T[H:2H] | lstm.weight_hh.T]
    w_ch_ref,      # (H, H)         combine.weight.T[H:2H]
    w_gx_ref,      # (H, 4H)        lstm.weight_ih.T
    w_out_ref,     # (H, PV)        out.weight.T, zero-padded cols >= V
    bias_ref,      # (4, BW)        rows: attn(pad -1e30), gates, out(pad -1e30), comb
    logp_ref,      # (TP, PV)       per-step log-softmax (lane dense)
    attn_ref,      # (TP, PL)       per-step attention weights (lane dense)
    state_ref,     # (2, H)         final (h, c)
    tok_proj_ref,  # scratch (TP, PL+128)  hoisted token-side projections
    *, T,
):
    H = state0_ref.shape[1]
    PL = enc_ref.shape[0]
    PV = w_out_ref.shape[1]
    TP = emb_ref.shape[0]

    # Padded output rows (if any) would otherwise be uninitialized VMEM.
    if TP > T:
        logp_ref[...] = jnp.zeros_like(logp_ref)
        attn_ref[...] = jnp.zeros_like(attn_ref)

    # ---- hoisted token-only matmuls: one M=T push for all steps ----
    # tok_proj[:, :PL]      = emb @ attn.weight.T[:H]
    # tok_proj[:, PL:PL+H]  = emb @ combine.weight.T[:H]
    tok_proj_ref[...] = jnp.dot(emb_ref[...], w_tok_ref[...],
                                preferred_element_type=jnp.float32)

    def step(t, carry):
        h, c = carry                                    # each (1, H)

        row = tok_proj_ref[pl.ds(t, 1), :]              # (1, PL+128)

        # ---- fused h-dependent dot: [attn half | W_hh] in one 256-lane push ----
        hp = jnp.dot(h, w_h_ref[...], preferred_element_type=jnp.float32)  # (1, PL+4H)

        # ---- attn_weights = softmax(attn(cat(embedded, hidden))) ----
        attn_logits = row[:, 0:PL] + hp[:, 0:PL] + bias_ref[0:1, 0:PL]  # padded lanes -1e30
        m = jnp.max(attn_logits, axis=1, keepdims=True)
        e = jnp.exp(attn_logits - m)                    # padded lanes -> 0
        denom = jnp.sum(e, axis=1, keepdims=True)
        attn_w = e * pl.reciprocal(denom, approx=True)  # (1, PL)
        attn_ref[pl.ds(t, 1), :] = attn_w               # lane-dense row store

        # ---- attn_applied = bmm(attn_weights, encoder_outputs) ----
        attn_applied = jnp.dot(attn_w, enc_ref[...],
                               preferred_element_type=jnp.float32)      # (1, H)

        # ---- output = relu(attn_combine(cat(embedded, attn_applied))) ----
        x = (row[:, PL:PL + H]
             + jnp.dot(attn_applied, w_ch_ref[...], preferred_element_type=jnp.float32)
             + bias_ref[3:4, 0:H])
        x = jnp.maximum(x, 0.0)                         # (1, H)

        # ---- single-step LSTM cell (PyTorch gate order i, f, g, o) ----
        gates = (jnp.dot(x, w_gx_ref[...], preferred_element_type=jnp.float32)
                 + hp[:, PL:PL + 4 * H]
                 + bias_ref[1:2, 0:4 * H])              # (1, 4H)
        sig = jax.nn.sigmoid(gates)                     # one EUP sweep (i, f, o)
        tnh = jnp.tanh(gates)                           # one EUP sweep (g)
        i_g = sig[:, 0 * H:1 * H]
        f_g = sig[:, 1 * H:2 * H]
        g_g = tnh[:, 2 * H:3 * H]
        o_g = sig[:, 3 * H:4 * H]
        c_new = f_g * c + i_g * g_g
        h_new = o_g * jnp.tanh(c_new)

        # ---- output = log_softmax(out(h_new)) ----
        logits = (jnp.dot(h_new, w_out_ref[...], preferred_element_type=jnp.float32)
                  + bias_ref[2:3, 0:PV])                # padded lanes -1e30
        m2 = jnp.max(logits, axis=1, keepdims=True)
        sh = logits - m2
        lse = jnp.log(jnp.sum(jnp.exp(sh), axis=1, keepdims=True))
        logp_ref[pl.ds(t, 1), :] = sh - lse             # lane-dense row store

        return (h_new, c_new)

    h0 = state0_ref[0:1, :]
    c0 = state0_ref[1:2, :]
    hT, cT = lax.fori_loop(0, T, step, (h0, c0), unroll=True)
    state_ref[0:1, :] = hT
    state_ref[1:2, :] = cT


# ---------------------------------------------------------------------------
# Param packing (done once, "param-prep time")
# ---------------------------------------------------------------------------
def _round_up(x, m):
    return ((x + m - 1) // m) * m


def pack_params(params, max_length):
    H = params["w_comb_T"].shape[1]
    V = params["w_out_T"].shape[1]
    L = max_length
    PL = max(128, _round_up(L, 128))
    PV = max(128, _round_up(V, 128))
    BW = max(PL, PV, 4 * H)
    f = jnp.float32
    NEG = jnp.float32(-1e30)

    w_attn = params["w_attn_T"]                         # (2H, L)

    # token-side fused weight: [emb -> attn logits | emb -> combine], lane padded
    w_tok = jnp.zeros((H, PL + 128), f)
    w_tok = w_tok.at[:, :L].set(w_attn[0:H, :])
    w_tok = w_tok.at[:, PL:PL + H].set(params["w_comb_T"][0:H, :])

    # h-side fused weight: [h -> attn logits | h -> LSTM gates]
    w_h = jnp.zeros((H, PL + 4 * H), f)
    w_h = w_h.at[:, :L].set(w_attn[H:2 * H, :])
    w_h = w_h.at[:, PL:PL + 4 * H].set(params["w_gh_T"])

    w_out_pad = jnp.zeros((H, PV), f).at[:, :V].set(params["w_out_T"])

    biases = jnp.zeros((4, BW), f)
    biases = biases.at[0, :].set(NEG).at[0, :L].set(params["b_attn"].reshape(L))
    biases = biases.at[1, :4 * H].set(params["b_gates"].reshape(4 * H))
    biases = biases.at[2, :].set(NEG).at[2, :V].set(params["b_out"].reshape(V))
    biases = biases.at[3, :H].set(params["b_comb"].reshape(H))

    return {
        "H": H, "V": V, "L": L, "PL": PL, "PV": PV,
        "embedding": params["embedding"],               # (V, H)
        "w_tok": w_tok,
        "w_h": w_h,
        "w_comb_h": params["w_comb_T"][H:2 * H, :],     # (H, H)
        "w_gx": params["w_gx_T"],                       # (H, 4H)
        "w_out_pad": w_out_pad,
        "biases": biases,
    }


# ---------------------------------------------------------------------------
# Fused multi-step (teacher-forced) decode: one single-grid-step pallas_call.
# ---------------------------------------------------------------------------
def attn_decoder_decode(tokens, hidden, encoder_outputs, packed):
    H, V, L = packed["H"], packed["V"], packed["L"]
    PL, PV = packed["PL"], packed["PV"]
    BW = packed["biases"].shape[1]
    T = int(tokens.shape[0])
    TP = _round_up(max(T, 1), 8)                        # sublane-aligned row count
    f = jnp.float32

    # Pre-gather all embedding rows once in the wrapper (no per-step DMAs).
    emb_rows = jnp.take(packed["embedding"], tokens.astype(jnp.int32), axis=0)  # (T, H)
    emb_all = jnp.zeros((TP, H), f).at[:T, :].set(emb_rows.astype(f))

    state0 = jnp.concatenate(
        [hidden[0].reshape(1, H), hidden[1].reshape(1, H)], axis=0
    ).astype(f)                                                      # (2, H)
    enc_pad = jnp.zeros((PL, H), f).at[:L, :].set(encoder_outputs)   # (PL, H)

    kernel = functools.partial(attn_decoder_kernel, T=T)

    grid_spec = pltpu.PrefetchScalarGridSpec(
        num_scalar_prefetch=0,
        grid=(1,),                                       # single step; loop is in-kernel
        in_specs=[
            pl.BlockSpec((TP, H), lambda i: (0, 0)),             # embeddings
            pl.BlockSpec((2, H), lambda i: (0, 0)),              # initial (h, c)
            pl.BlockSpec((PL, H), lambda i: (0, 0)),             # encoder outputs
            pl.BlockSpec((H, PL + 128), lambda i: (0, 0)),       # token-side fused weight
            pl.BlockSpec((H, PL + 4 * H), lambda i: (0, 0)),     # h-side fused weight
            pl.BlockSpec((H, H), lambda i: (0, 0)),              # combine weight (attn half)
            pl.BlockSpec((H, 4 * H), lambda i: (0, 0)),          # lstm weight_ih
            pl.BlockSpec((H, PV), lambda i: (0, 0)),             # out weight
            pl.BlockSpec((4, BW), lambda i: (0, 0)),             # packed biases
        ],
        out_specs=[
            pl.BlockSpec((TP, PV), lambda i: (0, 0)),            # all log-probs
            pl.BlockSpec((TP, PL), lambda i: (0, 0)),            # all attention weights
            pl.BlockSpec((2, H), lambda i: (0, 0)),              # final (h, c)
        ],
        scratch_shapes=[pltpu.VMEM((TP, PL + 128), jnp.float32)],
    )

    logp_all, attn_all, state_out = pl.pallas_call(
        kernel,
        grid_spec=grid_spec,
        out_shape=(
            jax.ShapeDtypeStruct((TP, PV), f),
            jax.ShapeDtypeStruct((TP, PL), f),
            jax.ShapeDtypeStruct((2, H), f),
        ),
        compiler_params=pltpu.CompilerParams(
            dimension_semantics=("arbitrary",)),
    )(
        emb_all, state0, enc_pad,
        packed["w_tok"], packed["w_h"], packed["w_comb_h"], packed["w_gx"],
        packed["w_out_pad"], packed["biases"],
    )

    logp = logp_all[:T, :V]              # (T, V)
    attn = attn_all[:T, :L]              # (T, L)
    h_new = state_out[0:1].reshape(1, 1, H)
    c_new = state_out[1:2].reshape(1, 1, H)
    return logp, (h_new, c_new), attn


def attn_decoder_forward(token, hidden, encoder_outputs, packed):
    """Single decode step (matches the PyTorch module's forward)."""
    tokens = jnp.asarray(token, jnp.int32).reshape(1)
    logp, hid, attn = attn_decoder_decode(tokens, hidden, encoder_outputs, packed)
    return logp[0:1], hid, attn[0:1]


# ---------------------------------------------------------------------------
# Pure-jnp references
# ---------------------------------------------------------------------------
def reference_forward(token, hidden, encoder_outputs, params):
    H = params["embedding"].shape[1]
    emb = params["embedding"][token].reshape(1, H)
    h = hidden[0].reshape(1, H)
    c = hidden[1].reshape(1, H)

    cat_eh = jnp.concatenate([emb, h], axis=1)
    attn_w = jax.nn.softmax(cat_eh @ params["w_attn_T"] + params["b_attn"], axis=1)
    attn_applied = attn_w @ encoder_outputs
    x = jnp.concatenate([emb, attn_applied], axis=1) @ params["w_comb_T"] + params["b_comb"]
    x = jnp.maximum(x, 0.0)
    gates = x @ params["w_gx_T"] + h @ params["w_gh_T"] + params["b_gates"]
    i_g = jax.nn.sigmoid(gates[:, 0 * H:1 * H])
    f_g = jax.nn.sigmoid(gates[:, 1 * H:2 * H])
    g_g = jnp.tanh(gates[:, 2 * H:3 * H])
    o_g = jax.nn.sigmoid(gates[:, 3 * H:4 * H])
    c_new = f_g * c + i_g * g_g
    h_new = o_g * jnp.tanh(c_new)
    logits = h_new @ params["w_out_T"] + params["b_out"]
    return jax.nn.log_softmax(logits, axis=1), (h_new, c_new), attn_w


def reference_decode(tokens, hidden, encoder_outputs, params):
    H = params["embedding"].shape[1]
    logps, attns = [], []
    hid = hidden
    for tok in np.asarray(tokens):
        logp, (h, c), attn = reference_forward(int(tok), hid, encoder_outputs, params)
        hid = (h.reshape(1, 1, H), c.reshape(1, 1, H))
        logps.append(logp)
        attns.append(attn)
    return jnp.concatenate(logps, axis=0), hid, jnp.concatenate(attns, axis=0)


# ---------------------------------------------------------------------------
# Parameter construction (PyTorch layer shapes, stored transposed)
# ---------------------------------------------------------------------------
def make_params(key, hidden_size, output_size, max_length):
    H, V, L = hidden_size, output_size, max_length
    ks = jax.random.split(key, 12)
    f = jnp.float32

    def u(k, shape, scale):
        return jax.random.uniform(k, shape, f, -scale, scale)

    return {
        "embedding": jax.random.normal(ks[0], (V, H), f),
        "w_attn_T": u(ks[1], (2 * H, L), 1.0 / np.sqrt(2 * H)),
        "b_attn": u(ks[2], (1, L), 1.0 / np.sqrt(2 * H)),
        "w_comb_T": u(ks[3], (2 * H, H), 1.0 / np.sqrt(2 * H)),
        "b_comb": u(ks[4], (1, H), 1.0 / np.sqrt(2 * H)),
        "w_gx_T": u(ks[5], (H, 4 * H), 1.0 / np.sqrt(H)),
        "w_gh_T": u(ks[6], (H, 4 * H), 1.0 / np.sqrt(H)),
        "b_gates": u(ks[7], (1, 4 * H), 1.0 / np.sqrt(H))
                   + u(ks[8], (1, 4 * H), 1.0 / np.sqrt(H)),
        "w_out_T": u(ks[9], (H, V), 1.0 / np.sqrt(H)),
        "b_out": u(ks[10], (1, V), 1.0 / np.sqrt(H)),
    }


if __name__ == "__main__":
    hidden_size = 32     # H
    output_size = 64     # vocabulary size V
    max_length = 16      # L (max_article_len)
    n_steps = 8          # fused decode steps (single pallas_call)

    key = jax.random.PRNGKey(0)
    k_par, k_h, k_c, k_enc, k_tok = jax.random.split(key, 5)

    params = make_params(k_par, hidden_size, output_size, max_length)
    packed = pack_params(params, max_length)

    hidden = (
        jax.random.normal(k_h, (1, 1, hidden_size), jnp.float32),
        jax.random.normal(k_c, (1, 1, hidden_size), jnp.float32),
    )
    encoder_outputs = jax.random.normal(k_enc, (max_length, hidden_size), jnp.float32)
    tokens = jax.random.randint(k_tok, (n_steps,), 0, output_size, jnp.int32)

    # Tolerance is loosened slightly because the attention softmax uses the
    # EUP approximate reciprocal (pl.reciprocal(..., approx=True)).
    TOL = 5e-3

    # ---- single decode step (module semantics, T=1) ----
    token0 = tokens[0]
    logp1, (h1, c1), attn1 = attn_decoder_forward(token0, hidden, encoder_outputs, packed)
    jax.block_until_ready((logp1, h1, c1, attn1))
    logp1_r, (h1_r, c1_r), attn1_r = reference_forward(token0, hidden, encoder_outputs, params)
    np.testing.assert_allclose(np.asarray(logp1), np.asarray(logp1_r), rtol=TOL, atol=TOL)
    np.testing.assert_allclose(np.asarray(h1).reshape(1, -1), np.asarray(h1_r), rtol=TOL, atol=TOL)
    np.testing.assert_allclose(np.asarray(c1).reshape(1, -1), np.asarray(c1_r), rtol=TOL, atol=TOL)
    np.testing.assert_allclose(np.asarray(attn1), np.asarray(attn1_r), rtol=TOL, atol=TOL)

    # ---- fused multi-step decode: all n_steps tokens in ONE kernel launch ----
    logp_all, (hT, cT), attn_all = attn_decoder_decode(tokens, hidden, encoder_outputs, packed)
    jax.block_until_ready((logp_all, hT, cT, attn_all))
    logp_r, (hT_r, cT_r), attn_r = reference_decode(tokens, hidden, encoder_outputs, params)
    np.testing.assert_allclose(np.asarray(logp_all), np.asarray(logp_r), rtol=TOL, atol=TOL)
    np.testing.assert_allclose(np.asarray(attn_all), np.asarray(attn_r), rtol=TOL, atol=TOL)
    np.testing.assert_allclose(np.asarray(hT), np.asarray(hT_r), rtol=TOL, atol=TOL)
    np.testing.assert_allclose(np.asarray(cT), np.asarray(cT_r), rtol=TOL, atol=TOL)

    print("KERNEL_OK")
</pallas_src>

<mosaic_0001>
module attributes {stable_mosaic.version = 11 : i64} {
  func.func @attn_decoder_kernel(%arg0: i32, %arg1: memref<8x32xf32, #tpu.memory_space<vmem>>, %arg2: memref<2x32xf32, #tpu.memory_space<vmem>>, %arg3: memref<128x32xf32, #tpu.memory_space<vmem>>, %arg4: memref<32x256xf32, #tpu.memory_space<vmem>>, %arg5: memref<32x256xf32, #tpu.memory_space<vmem>>, %arg6: memref<32x32xf32, #tpu.memory_space<vmem>>, %arg7: memref<32x128xf32, #tpu.memory_space<vmem>>, %arg8: memref<32x128xf32, #tpu.memory_space<vmem>>, %arg9: memref<4x128xf32, #tpu.memory_space<vmem>>, %arg10: memref<8x128xf32, #tpu.memory_space<vmem>>, %arg11: memref<8x128xf32, #tpu.memory_space<vmem>>, %arg12: memref<2x32xf32, #tpu.memory_space<vmem>>, %arg13: memref<8x256xf32, #tpu.memory_space<vmem>>) attributes {dimension_semantics = [#tpu.dimension_semantics<arbitrary>], iteration_bounds = array<i64: 1>, scalar_prefetch = 0 : i64, scratch_operands = 1 : i64, tpu.core_type = #tpu.core_type<tc>, window_params = [{pipeline_mode = #tpu.pipeline_mode<synchronous>, transform_indices = @transform_0, window_bounds = array<i64: 8, 32>}, {pipeline_mode = #tpu.pipeline_mode<synchronous>, transform_indices = @transform_1, window_bounds = array<i64: 2, 32>}, {pipeline_mode = #tpu.pipeline_mode<synchronous>, transform_indices = @transform_2, window_bounds = array<i64: 128, 32>}, {pipeline_mode = #tpu.pipeline_mode<synchronous>, transform_indices = @transform_3, window_bounds = array<i64: 32, 256>}, {pipeline_mode = #tpu.pipeline_mode<synchronous>, transform_indices = @transform_4, window_bounds = array<i64: 32, 256>}, {pipeline_mode = #tpu.pipeline_mode<synchronous>, transform_indices = @transform_5, window_bounds = array<i64: 32, 32>}, {pipeline_mode = #tpu.pipeline_mode<synchronous>, transform_indices = @transform_6, window_bounds = array<i64: 32, 128>}, {pipeline_mode = #tpu.pipeline_mode<synchronous>, transform_indices = @transform_7, window_bounds = array<i64: 32, 128>}, {pipeline_mode = #tpu.pipeline_mode<synchronous>, transform_indices = @transform_8, window_bounds = array<i64: 4, 128>}, {pipeline_mode = #tpu.pipeline_mode<synchronous>, transform_indices = @transform_9, window_bounds = array<i64: 8, 128>}, {pipeline_mode = #tpu.pipeline_mode<synchronous>, transform_indices = @transform_10, window_bounds = array<i64: 8, 128>}, {pipeline_mode = #tpu.pipeline_mode<synchronous>, transform_indices = @transform_11, window_bounds = array<i64: 2, 32>}]} {
    %cst = arith.constant 0.000000e+00 : f32
    %0 = vector.broadcast %cst : f32 to vector<8x128xf32>
    %c0 = arith.constant 0 : index
    %c0_0 = arith.constant 0 : index
    %1 = vector.load %arg10[%c0, %c0_0] : memref<8x128xf32, #tpu.memory_space<vmem>>, vector<8x128xf32>
    tpu.vector_store %arg10[%c0, %c0_0], %0 {strides = array<i32>} : memref<8x128xf32, #tpu.memory_space<vmem>>, vector<8x128xf32>,
    %cst_1 = arith.constant 0.000000e+00 : f32
    %2 = vector.broadcast %cst_1 : f32 to vector<8x128xf32>
    %c0_2 = arith.constant 0 : index
    %c0_3 = arith.constant 0 : index
    %3 = vector.load %arg11[%c0_2, %c0_3] : memref<8x128xf32, #tpu.memory_space<vmem>>, vector<8x128xf32>
    tpu.vector_store %arg11[%c0_2, %c0_3], %2 {strides = array<i32>} : memref<8x128xf32, #tpu.memory_space<vmem>>, vector<8x128xf32>,
    %c0_4 = arith.constant 0 : index
    %c0_5 = arith.constant 0 : index
    %4 = vector.load %arg1[%c0_4, %c0_5] : memref<8x32xf32, #tpu.memory_space<vmem>>, vector<8x32xf32>
    %c0_6 = arith.constant 0 : index
    %c0_7 = arith.constant 0 : index
    %5 = vector.load %arg4[%c0_6, %c0_7] : memref<32x256xf32, #tpu.memory_space<vmem>>, vector<32x256xf32>
    %cst_8 = arith.constant dense<0.000000e+00> : vector<8x256xf32>
    %6 = tpu.matmul %4, %5, %cst_8 {dimension_numbers = #tpu.dot_dimension_numbers<[1], [0], [0], [1], [0, 0, 1, 1], [], []>} : vector<8x32xf32>, vector<32x256xf32>, vector<8x256xf32> -> vector<8x256xf32>
    %c0_9 = arith.constant 0 : index
    %c0_10 = arith.constant 0 : index
    %7 = vector.load %arg13[%c0_9, %c0_10] : memref<8x256xf32, #tpu.memory_space<vmem>>, vector<8x256xf32>
    tpu.vector_store %arg13[%c0_9, %c0_10], %6 {strides = array<i32>} : memref<8x256xf32, #tpu.memory_space<vmem>>, vector<8x256xf32>,
    %c0_11 = arith.constant 0 : index
    %c0_12 = arith.constant 0 : index
    %8 = vector.load %arg2[%c0_11, %c0_12] : memref<2x32xf32, #tpu.memory_space<vmem>>, vector<1x32xf32>
    %c1 = arith.constant 1 : index
    %c0_13 = arith.constant 0 : index
    %9 = vector.load %arg2[%c1, %c0_13] : memref<2x32xf32, #tpu.memory_space<vmem>>, vector<1x32xf32>
    %c0_i32 = arith.constant 0 : i32
    %10 = arith.index_cast %c0_i32 : i32 to index
    %c0_14 = arith.constant 0 : index
    %11 = vector.load %arg13[%10, %c0_14] : memref<8x256xf32, #tpu.memory_space<vmem>>, vector<1x256xf32>
    %c0_15 = arith.constant 0 : index
    %c0_16 = arith.constant 0 : index
    %12 = vector.load %arg5[%c0_15, %c0_16] : memref<32x256xf32, #tpu.memory_space<vmem>>, vector<32x256xf32>
    %cst_17 = arith.constant dense<0.000000e+00> : vector<1x256xf32>
    %13 = tpu.matmul %8, %12, %cst_17 {dimension_numbers = #tpu.dot_dimension_numbers<[1], [0], [0], [1], [0, 0, 1, 1], [], []>} : vector<1x32xf32>, vector<32x256xf32>, vector<1x256xf32> -> vector<1x256xf32>
    %14 = vector.extract_strided_slice %11 {offsets = [0, 0], sizes = [1, 128], strides = [1, 1]} : vector<1x256xf32> to vector<1x128xf32>
    %15 = vector.extract_strided_slice %13 {offsets = [0, 0], sizes = [1, 128], strides = [1, 1]} : vector<1x256xf32> to vector<1x128xf32>
    %16 = arith.addf %14, %15 : vector<1x128xf32>
    %c0_18 = arith.constant 0 : index
    %c0_19 = arith.constant 0 : index
    %17 = vector.load %arg9[%c0_18, %c0_19] : memref<4x128xf32, #tpu.memory_space<vmem>>, vector<1x128xf32>
    %18 = arith.addf %16, %17 : vector<1x128xf32>
    %cst_20 = arith.constant dense<0xFF800000> : vector<1xf32>
    %19 = vector.multi_reduction <maximumf>, %18, %cst_20 [1] : vector<1x128xf32> to vector<1xf32>
    %20 = vector.shape_cast %19 : vector<1xf32> to vector<1x1xf32>
    %21 = vector.broadcast %20 : vector<1x1xf32> to vector<1x128xf32>
    %22 = arith.subf %18, %21 : vector<1x128xf32>
    %23 = math.exp %22 : vector<1x128xf32>
    %cst_21 = arith.constant dense<0.000000e+00> : vector<1xf32>
    %24 = vector.multi_reduction <add>, %23, %cst_21 [1] : vector<1x128xf32> to vector<1xf32>
    %25 = vector.shape_cast %24 : vector<1xf32> to vector<1x1xf32>
    %26 = tpu.reciprocal %25 {approx = true} : vector<1x1xf32> -> vector<1x1xf32>
    %27 = vector.broadcast %26 : vector<1x1xf32> to vector<1x128xf32>
    %28 = arith.mulf %23, %27 : vector<1x128xf32>
    %29 = arith.index_cast %c0_i32 : i32 to index
    %c0_22 = arith.constant 0 : index
    %30 = vector.load %arg11[%29, %c0_22] : memref<8x128xf32, #tpu.memory_space<vmem>>, vector<1x128xf32>
    tpu.vector_store %arg11[%29, %c0_22], %28 {strides = array<i32>} : memref<8x128xf32, #tpu.memory_space<vmem>>, vector<1x128xf32>,
    %c0_23 = arith.constant 0 : index
    %c0_24 = arith.constant 0 : index
    %31 = vector.load %arg3[%c0_23, %c0_24] : memref<128x32xf32, #tpu.memory_space<vmem>>, vector<128x32xf32>
    %cst_25 = arith.constant dense<0.000000e+00> : vector<1x32xf32>
    %32 = tpu.matmul %28, %31, %cst_25 {dimension_numbers = #tpu.dot_dimension_numbers<[1], [0], [0], [1], [0, 0, 1, 1], [], []>} : vector<1x128xf32>, vector<128x32xf32>, vector<1x32xf32> -> vector<1x32xf32>
    %33 = vector.extract_strided_slice %11 {offsets = [0, 128], sizes = [1, 32], strides = [1, 1]} : vector<1x256xf32> to vector<1x32xf32>
    %c0_26 = arith.constant 0 : index
    %c0_27 = arith.constant 0 : index
    %34 = vector.load %arg6[%c0_26, %c0_27] : memref<32x32xf32, #tpu.memory_space<vmem>>, vector<32x32xf32>
    %cst_28 = arith.constant dense<0.000000e+00> : vector<1x32xf32>
    %35 = tpu.matmul %32, %34, %cst_28 {dimension_numbers = #tpu.dot_dimension_numbers<[1], [0], [0], [1], [0, 0, 1, 1], [], []>} : vector<1x32xf32>, vector<32x32xf32>, vector<1x32xf32> -> vector<1x32xf32>
    %36 = arith.addf %33, %35 : vector<1x32xf32>
    %c3 = arith.constant 3 : index
    %c0_29 = arith.constant 0 : index
    %37 = vector.load %arg9[%c3, %c0_29] : memref<4x128xf32, #tpu.memory_space<vmem>>, vector<1x32xf32>
    %38 = arith.addf %36, %37 : vector<1x32xf32>
    %cst_30 = arith.constant 0.000000e+00 : f32
    %39 = vector.broadcast %cst_30 : f32 to vector<1x32xf32>
    %40 = arith.maximumf %38, %39 : vector<1x32xf32>
    %c0_31 = arith.constant 0 : index
    %c0_32 = arith.constant 0 : index
    %41 = vector.load %arg7[%c0_31, %c0_32] : memref<32x128xf32, #tpu.memory_space<vmem>>, vector<32x128xf32>
    %cst_33 = arith.constant dense<0.000000e+00> : vector<1x128xf32>
    %42 = tpu.matmul %40, %41, %cst_33 {dimension_numbers = #tpu.dot_dimension_numbers<[1], [0], [0], [1], [0, 0, 1, 1], [], []>} : vector<1x32xf32>, vector<32x128xf32>, vector<1x128xf32> -> vector<1x128xf32>
    %43 = vector.extract_strided_slice %13 {offsets = [0, 128], sizes = [1, 128], strides = [1, 1]} : vector<1x256xf32> to vector<1x128xf32>
    %44 = arith.addf %42, %43 : vector<1x128xf32>
    %c1_34 = arith.constant 1 : index
    %c0_35 = arith.constant 0 : index
    %45 = vector.load %arg9[%c1_34, %c0_35] : memref<4x128xf32, #tpu.memory_space<vmem>>, vector<1x128xf32>
    %46 = arith.addf %44, %45 : vector<1x128xf32>
    %47 = arith.negf %46 : vector<1x128xf32>
    %48 = math.exp %47 : vector<1x128xf32>
    %cst_36 = arith.constant 1.000000e+00 : f32
    %49 = vector.broadcast %cst_36 : f32 to vector<1x128xf32>
    %50 = arith.addf %49, %48 : vector<1x128xf32>
    %51 = arith.divf %49, %50 : vector<1x128xf32>
    %52 = math.tanh %46 : vector<1x128xf32>
    %53 = vector.extract_strided_slice %51 {offsets = [0, 0], sizes = [1, 32], strides = [1, 1]} : vector<1x128xf32> to vector<1x32xf32>
    %54 = vector.extract_strided_slice %51 {offsets = [0, 32], sizes = [1, 32], strides = [1, 1]} : vector<1x128xf32> to vector<1x32xf32>
    %55 = vector.extract_strided_slice %52 {offsets = [0, 64], sizes = [1, 32], strides = [1, 1]} : vector<1x128xf32> to vector<1x32xf32>
    %56 = vector.extract_strided_slice %51 {offsets = [0, 96], sizes = [1, 32], strides = [1, 1]} : vector<1x128xf32> to vector<1x32xf32>
    %57 = arith.mulf %54, %9 : vector<1x32xf32>
    %58 = arith.mulf %53, %55 : vector<1x32xf32>
    %59 = arith.addf %57, %58 : vector<1x32xf32>
    %60 = math.tanh %59 : vector<1x32xf32>
    %61 = arith.mulf %56, %60 : vector<1x32xf32>
    %c0_37 = arith.constant 0 : index
    %c0_38 = arith.constant 0 : index
    %62 = vector.load %arg8[%c0_37, %c0_38] : memref<32x128xf32, #tpu.memory_space<vmem>>, vector<32x128xf32>
    %cst_39 = arith.constant dense<0.000000e+00> : vector<1x128xf32>
    %63 = tpu.matmul %61, %62, %cst_39 {dimension_numbers = #tpu.dot_dimension_numbers<[1], [0], [0], [1], [0, 0, 1, 1], [], []>} : vector<1x32xf32>, vector<32x128xf32>, vector<1x128xf32> -> vector<1x128xf32>
    %c2 = arith.constant 2 : index
    %c0_40 = arith.constant 0 : index
    %64 = vector.load %arg9[%c2, %c0_40] : memref<4x128xf32, #tpu.memory_space<vmem>>, vector<1x128xf32>
    %65 = arith.addf %63, %64 : vector<1x128xf32>
    %cst_41 = arith.constant dense<0xFF800000> : vector<1xf32>
    %66 = vector.multi_reduction <maximumf>, %65, %cst_41 [1] : vector<1x128xf32> to vector<1xf32>
    %67 = vector.shape_cast %66 : vector<1xf32> to vector<1x1xf32>
    %68 = vector.broadcast %67 : vector<1x1xf32> to vector<1x128xf32>
    %69 = arith.subf %65, %68 : vector<1x128xf32>
    %70 = math.exp %69 : vector<1x128xf32>
    %cst_42 = arith.constant dense<0.000000e+00> : vector<1xf32>
    %71 = vector.multi_reduction <add>, %70, %cst_42 [1] : vector<1x128xf32> to vector<1xf32>
    %72 = vector.shape_cast %71 : vector<1xf32> to vector<1x1xf32>
    %73 = math.log %72 : vector<1x1xf32>
    %74 = vector.broadcast %73 : vector<1x1xf32> to vector<1x128xf32>
    %75 = arith.subf %69, %74 : vector<1x128xf32>
    %76 = arith.index_cast %c0_i32 : i32 to index
    %c0_43 = arith.constant 0 : index
    %77 = vector.load %arg10[%76, %c0_43] : memref<8x128xf32, #tpu.memory_space<vmem>>, vector<1x128xf32>
    tpu.vector_store %arg10[%76, %c0_43], %75 {strides = array<i32>} : memref<8x128xf32, #tpu.memory_space<vmem>>, vector<1x128xf32>,
    %c1_i32 = arith.constant 1 : i32
    %c0_44 = arith.constant 0 : index
    %c0_45 = arith.constant 0 : index
    %78 = vector.load %arg12[%c0_44, %c0_45] : memref<2x32xf32, #tpu.memory_space<vmem>>, vector<1x32xf32>
    tpu.vector_store %arg12[%c0_44, %c0_45], %61 {strides = array<i32>} : memref<2x32xf32, #tpu.memory_space<vmem>>, vector<1x32xf32>,
    %c1_46 = arith.constant 1 : index
    %c0_47 = arith.constant 0 : index
    %79 = vector.load %arg12[%c1_46, %c0_47] : memref<2x32xf32, #tpu.memory_space<vmem>>, vector<1x32xf32>
    tpu.vector_store %arg12[%c1_46, %c0_47], %59 {strides = array<i32>} : memref<2x32xf32, #tpu.memory_space<vmem>>, vector<1x32xf32>,
    return
  }
  func.func @transform_0(%arg0: i32) -> (i32, i32) {
    %c0_i32 = arith.constant 0 : i32
    %c0_i32_0 = arith.constant 0 : i32
    %c0_i32_1 = arith.constant 0 : i32
    return %c0_i32, %c0_i32_0 : i32, i32
  }
  func.func @transform_1(%arg0: i32) -> (i32, i32) {
    %c0_i32 = arith.constant 0 : i32
    %c0_i32_0 = arith.constant 0 : i32
    %c0_i32_1 = arith.constant 0 : i32
    return %c0_i32, %c0_i32_0 : i32, i32
  }
  func.func @transform_2(%arg0: i32) -> (i32, i32) {
    %c0_i32 = arith.constant 0 : i32
    %c0_i32_0 = arith.constant 0 : i32
    %c0_i32_1 = arith.constant 0 : i32
    return %c0_i32, %c0_i32_0 : i32, i32
  }
  func.func @transform_3(%arg0: i32) -> (i32, i32) {
    %c0_i32 = arith.constant 0 : i32
    %c0_i32_0 = arith.constant 0 : i32
    %c0_i32_1 = arith.constant 0 : i32
    return %c0_i32, %c0_i32_0 : i32, i32
  }
  func.func @transform_4(%arg0: i32) -> (i32, i32) {
    %c0_i32 = arith.constant 0 : i32
    %c0_i32_0 = arith.constant 0 : i32
    %c0_i32_1 = arith.constant 0 : i32
    return %c0_i32, %c0_i32_0 : i32, i32
  }
  func.func @transform_5(%arg0: i32) -> (i32, i32) {
    %c0_i32 = arith.constant 0 : i32
    %c0_i32_0 = arith.constant 0 : i32
    %c0_i32_1 = arith.constant 0 : i32
    return %c0_i32, %c0_i32_0 : i32, i32
  }
  func.func @transform_6(%arg0: i32) -> (i32, i32) {
    %c0_i32 = arith.constant 0 : i32
    %c0_i32_0 = arith.constant 0 : i32
    %c0_i32_1 = arith.constant 0 : i32
    return %c0_i32, %c0_i32_0 : i32, i32
  }
  func.func @transform_7(%arg0: i32) -> (i32, i32) {
    %c0_i32 = arith.constant 0 : i32
    %c0_i32_0 = arith.constant 0 : i32
    %c0_i32_1 = arith.constant 0 : i32
    return %c0_i32, %c0_i32_0 : i32, i32
  }
  func.func @transform_8(%arg0: i32) -> (i32, i32) {
    %c0_i32 = arith.constant 0 : i32
    %c0_i32_0 = arith.constant 0 : i32
    %c0_i32_1 = arith.constant 0 : i32
    return %c0_i32, %c0_i32_0 : i32, i32
  }
  func.func @transform_9(%arg0: i32) -> (i32, i32) {
    %c0_i32 = arith.constant 0 : i32
    %c0_i32_0 = arith.constant 0 : i32
    %c0_i32_1 = arith.constant 0 : i32
    return %c0_i32, %c0_i32_0 : i32, i32
  }
  func.func @transform_10(%arg0: i32) -> (i32, i32) {
    %c0_i32 = arith.constant 0 : i32
    %c0_i32_0 = arith.constant 0 : i32
    %c0_i32_1 = arith.constant 0 : i32
    return %c0_i32, %c0_i32_0 : i32, i32
  }
  func.func @transform_11(%arg0: i32) -> (i32, i32) {
    %c0_i32 = arith.constant 0 : i32
    %c0_i32_0 = arith.constant 0 : i32
    %c0_i32_1 = arith.constant 0 : i32
    return %c0_i32, %c0_i32_0 : i32, i32
  }
}

</mosaic_0001>

<bundles_post_ra>
// kernel: tpu_custom_call.1
= control target key start
LH: loop header
LB: loop body
LE: loop exit
PB: predicated region body
PF: predicated region fallthrough
CT: control target
= control target key end

     0   :  { %17 = vsyncpa [#allocation4], 0  ;;  %s1342_s0 = inlined_call_operand.hbm [shape: f32[8,32], index: 0, kind: input, shape index: {}]   ;;  %s1343_s1 = inlined_call_operand.vmem [shape: f32[2,32], index: 1, kind: input, shape index: {}]   ;;  %s1344_s2 = inlined_call_operand.vmem [shape: f32[128,32], index: 2, kind: input, shape index: {}]   ;;  %s1345_s3 = inlined_call_operand.vmem [shape: f32[32,256], index: 3, kind: input, shape index: {}]   ;;  %s1346_s4 = inlined_call_operand.vmem [shape: f32[32,256], index: 4, kind: input, shape index: {}]   ;;  %s1347_s5 = inlined_call_operand.vmem [shape: f32[32,32], index: 5, kind: input, shape index: {}]   ;;  %s1348_s6 = inlined_call_operand.hbm [shape: f32[32,128], index: 6, kind: input, shape index: {}]   ;;  %s1349_s7 = inlined_call_operand.hbm [shape: f32[32,128], index: 7, kind: input, shape index: {}]   ;;  %s1350_s8 = inlined_call_operand.vmem [shape: f32[4,128], index: 8, kind: input, shape index: {}]   ;;  %s1351_s9 = inlined_call_operand.hbm [shape: f32[8,128], index: 9, kind: output, shape index: {0}]   ;;  %s1352_s10 = inlined_call_operand.hbm [shape: f32[8,128], index: 10, kind: output, shape index: {1}]   ;;  %s1353_s11 = inlined_call_operand.hbm [shape: f32[2,32], index: 11, kind: output, shape index: {2}]  }
   0x1   :  { %18 = vsyncpa [#allocation7], 0 }
   0x2   :  { %19 = vsyncpa [#allocation5], 0 }
   0x3   :  { %20 = vsyncpa [#allocation11], 0  ;;  %s1020_s17 = smov [#allocation6]   ;;  %s880_s21 = scalar_lea.hbm %s1348_s6, 512 }
   0x4   :  { %s46_s18 = sshll.u32 %s1020_s17, 4  ;;  %p881_p0 = scmp.ne.s32.totalorder %s1348_s6, %s880_s21  ;;  %s47_s18 = int_to_ptr.vmem [resolvable:$true] %s46_s18 }
   0x5   :  { %p884_p1 = scmp.lt.u32.totalorder %s880_s21, %s1348_s6 }
   0x7   :  { %p886_p2 = pnand %p884_p1, %p881_p0 }
   0x9   :  { %889 = shalt.err (!%p886_p2)
}
   0xa   :  { %s890_s26 = scalar_lea.vmem %s47_s18, 512  ;;  %p895_p4 = scmp.lt.s32.totalorder %s47_s18, %s47_s18 }
   0xb   :  { %p891_p3 = scmp.ne.s32.totalorder %s47_s18, %s890_s26  ;;  %p896_p5 = scmp.lt.s32.totalorder %s890_s26, %s890_s26 }
   0xd   :  { %p897_p6 = por %p896_p5, %p895_p4 }
   0xf   :  { %p898_p7 = pnand %p897_p6, %p891_p3 }
  0x11   :  { %901 = shalt.err (!%p898_p7)
}
  0x12   :  { %s1021_s27 = smov 128   ;;  %s1022_s28 = smov 8  }
  0x13   :  { %52 = dma.hbm_to_vmem [thread:$0]  %s1348_s6, 512, %s47_s18, [#allocation7], %s1021_s27, %s1021_s27, %s1022_s28  }
  0x14   :  { %s1023_s12 = smov [#allocation3]   ;;  %s1024_s14 = smov [#allocation8]  }
  0x15   :  { %s27_s13 = sshll.u32 %s1023_s12, 4  ;;  %s58_s15 = sshll.u32 %s1024_s14, 4  ;;  %s28_s13 = int_to_ptr.vmem [resolvable:$true] %s27_s13  ;;  %s59_s15 = int_to_ptr.vmem [resolvable:$true] %s58_s15 }
  0x16   :  { %s902_s19 = scalar_lea.hbm %s1342_s0, 128 }
  0x17   :  { %p903_p8 = scmp.ne.s32.totalorder %s1342_s0, %s902_s19  ;;  %p906_p9 = scmp.lt.u32.totalorder %s902_s19, %s1342_s0 }
  0x19   :  { %p908_p10 = pnand %p906_p9, %p903_p8 }
  0x1b   :  { %911 = shalt.err (!%p908_p10)
}
  0x1c   :  { %s912_s6 = scalar_lea.vmem %s28_s13, 128  ;;  %p917_p12 = scmp.lt.s32.totalorder %s28_s13, %s28_s13 }
  0x1d   :  { %p913_p11 = scmp.ne.s32.totalorder %s28_s13, %s912_s6  ;;  %p918_p13 = scmp.lt.s32.totalorder %s912_s6, %s912_s6 }
  0x1f   :  { %p919_p0 = por %p918_p13, %p917_p12 }
  0x21   :  { %p920_p1 = pnand %p919_p0, %p913_p11 }
  0x23   :  { %923 = shalt.err (!%p920_p1)
}
  0x24   :  { %30 = dma.hbm_to_vmem [thread:$0]  %s1342_s0, 128, %s28_s13, [#allocation4]  }
  0x25   :  { %s924_s29 = scalar_lea.hbm %s1349_s7, 512 }
  0x26   :  { %p925_p2 = scmp.ne.s32.totalorder %s1349_s7, %s924_s29  ;;  %p928_p3 = scmp.lt.u32.totalorder %s924_s29, %s1349_s7 }
  0x28   :  { %p930_p4 = pnand %p928_p3, %p925_p2 }
  0x2a   :  { %933 = shalt.err (!%p930_p4)
}
  0x2b   :  { %s934_s17 = scalar_lea.vmem %s59_s15, 512  ;;  %p939_p6 = scmp.lt.s32.totalorder %s59_s15, %s59_s15 }
  0x2c   :  { %p935_p5 = scmp.ne.s32.totalorder %s59_s15, %s934_s17  ;;  %p940_p7 = scmp.lt.s32.totalorder %s934_s17, %s934_s17 }
  0x2e   :  { %p941_p8 = por %p940_p7, %p939_p6 }
  0x30   :  { %p942_p9 = pnand %p941_p8, %p935_p5 }
  0x32   :  { %945 = shalt.err (!%p942_p9)
}
  0x33   :  { %64 = dma.hbm_to_vmem [thread:$0]  %s1349_s7, 512, %s59_s15, [#allocation7], %s1021_s27, %s1021_s27, %s1022_s28  }
  0x34   :  { %1012 = dma.done.wait [#allocation4], 128  }
  0x35   :  { %1013 = vsyncadd [#allocation4], 4294967168 }
  0x36   :  { %1014 = dma.done.wait [#allocation7], 1024  }
  0x37   :  { %1015 = vsyncadd [#allocation7], 4294966272  ;;  %v1025_v0 = vmov 0.0   ;;  %v80_v1 = vld [vmem:[%s1345_s3 + $0x8] sm:$0xff]  ;;  %v82_v2 = vld [vmem:[%s1345_s3 + $0x18] sm:$0xff]  ;;  %vm87_vm0 = vcmask 261120  }
  0x38   :  { %155 = vmatprep.mubr.f32.mxu0 %v1025_v0  ;;  %76 = vst [vmem:[#allocation9] sm:$0xff] %v1025_v0  ;;  %77 = vst [vmem:[#allocation10] sm:$0xff] %v1025_v0  ;;  %242 = vmatprep.mubr.f32.mxu1 %v1025_v0  ;;  %v79_v3 = vld [vmem:[%s1345_s3] sm:$0xff]  ;;  %v792_v4 = vpack.c.bf16 %v82_v2, %v80_v1  ;;  %v81_v5 = vld [vmem:[%s1345_s3 + $0x10] sm:$0xff]  ;;  %vm252_vm1 = vcmask 1040384   ;;  %v1026_v39 = vmov 0.0|0.0  }
  0x39   :  { %v84_v6 = vld [vmem:[%s1345_s3 + $0x28] sm:$0xff]  ;;  %v86_v7 = vld [vmem:[%s1345_s3 + $0x38] sm:$0xff]  ;;  %v794_v8 = vpack.c.bf16 %v81_v5, %v79_v3  ;;  %v83_v10 = vld [vmem:[%s1345_s3 + $0x20] sm:$0xff]  ;;  %vm1027_vm2 = vmmov 0   ;;  %s1028_s15 = smov 64   ;;  %s1029_s18 = smov 32  }
  0x3a   :  { %v796_v9 = vpack.c.bf16 %v86_v7, %v84_v6  ;;  %v85_v11 = vld [vmem:[%s1345_s3 + $0x30] sm:$0xff]  ;;  %793 = vmatprep.subr.bf16.mxu0 %v792_v4  ;;  %v168_v12 = vld [vmem:[%s1346_s4 + $0x8] sm:$0xff]  ;;  %v170_v13 = vld [vmem:[%s1346_s4 + $0x18] sm:$0xff]  ;;  %vm636_vm3 = vcmask 253952   ;;  %s1030_s24 = smov 96  }
  0x3b   :  { %v167_v14 = vld [vmem:[%s1346_s4] sm:$0xff]  ;;  %795 = vmatpush1.bf16.msra.mxu0 %v794_v8  ;;  %v798_v15 = vpack.c.bf16 %v85_v11, %v83_v10  ;;  %v800_v16 = vpack.c.bf16 %v170_v13, %v168_v12  ;;  %v169_v17 = vld [vmem:[%s1346_s4 + $0x10] sm:$0xff]  ;;  %v172_v18 = vld [vmem:[%s1346_s4 + $0x28] sm:$0xff] }
  0x3c   :  { %v174_v19 = vld [vmem:[%s1346_s4 + $0x38] sm:$0xff]  ;;  %797 = vmatprep.subr.bf16.mxu0 %v796_v9  ;;  %v802_v20 = vpack.c.bf16 %v169_v17, %v167_v14  ;;  %v171_v22 = vld [vmem:[%s1346_s4 + $0x20] sm:$0xff]  ;;  %v173_v23 = vld [vmem:[%s1346_s4 + $0x30] sm:$0xff] }
  0x3d   :  { %v804_v21 = vpack.c.bf16 %v174_v19, %v172_v18  ;;  %801 = vmatprep.subr.bf16.mxu1 %v800_v16  ;;  %v806_v24 = vpack.c.bf16 %v173_v23, %v171_v22  ;;  %v78_v25 = vld [vmem:[#allocation3] sm:$0xff]  ;;  %v164_v26 = vld [vmem:[%s1343_s1] sm:$0x1]  ;;  %v266_v37 = vld [vmem:[%s1344_s2 + $0x8] sm:$0xff] }
  0x3e   :  { %803 = vmatpush1.bf16.msra.mxu1 %v802_v20  ;;  %v250_v32 = vld [vmem:[%s1350_s8] sm:$0x1]  ;;  %v267_v38 = vld [vmem:[%s1344_s2 + $0x10] sm:$0xff]  ;;  %v268_v41 = vld [vmem:[%s1344_s2 + $0x18] sm:$0xff] }
  0x3f   :  { %799 = vmatpush1.bf16.msra.mxu0 %v798_v15  ;;  %805 = vmatprep.subr.bf16.mxu1 %v804_v21  ;;  %v265_v36 = vld [vmem:[%s1344_s2] sm:$0xff]  ;;  %v812_v42 = vpack.c.bf16 %v268_v41, %v267_v38  ;;  %v270_v44 = vld [vmem:[%s1344_s2 + $0x28] sm:$0xff]  ;;  %v271_v46 = vld [vmem:[%s1344_s2 + $0x30] sm:$0xff] }
  0x40   :  { %808 = vmatprep.subr.bf16.mxu0 %v1026_v39  ;;  %v809_v40 = vpack.c.bf16 %v266_v37, %v265_v36  ;;  %v269_v43 = vld [vmem:[%s1344_s2 + $0x20] sm:$0xff]  ;;  %v272_v47 = vld [vmem:[%s1344_s2 + $0x38] sm:$0xff]  ;;  %v274_v50 = vld [vmem:[%s1344_s2 + $0x48] sm:$0xff] }
  0x41   :  { %v815_v45 = vpack.c.bf16 %v270_v44, %v269_v43  ;;  %v818_v48 = vpack.c.bf16 %v272_v47, %v271_v46  ;;  %v273_v49 = vld [vmem:[%s1344_s2 + $0x40] sm:$0xff]  ;;  %v275_v57 = vld [vmem:[%s1344_s2 + $0x50] sm:$0xff]  ;;  %v276_v58 = vld [vmem:[%s1344_s2 + $0x58] sm:$0xff] }
  0x42   :  { %686 = vmatmul.mubr.msk.f32.vlgmr.msra.gmra.mrb[0].mxu0 %vm87_vm0, %v78_v25  ;;  %807 = vmatpush1.bf16.msra.mxu1 %v806_v24  ;;  %v821_v51 = vpack.c.bf16 %v274_v50, %v273_v49  ;;  %v824_v59 = vpack.c.bf16 %v276_v58, %v275_v57  ;;  %v277_v60 = vld [vmem:[%s1344_s2 + $0x60] sm:$0xff]  ;;  %v278_v61 = vld [vmem:[%s1344_s2 + $0x68] sm:$0xff]  ;;  %v279_v63 = vld [vmem:[%s1344_s2 + $0x70] sm:$0xff] }
  0x43   :  { %832 = vmatprep.subr.bf16.mxu1 %v1026_v39  ;;  %810 = vmatpush3.bf16.msra.mxu0 %v809_v40  ;;  %v827_v62 = vpack.c.bf16 %v278_v61, %v277_v60  ;;  %v280_v1 = vld [vmem:[%s1344_s2 + $0x78] sm:$0xff]  ;;  %v351_v3 = vld [vmem:[%s1347_s5] sm:$0xff]  ;;  %v352_v4 = vld [vmem:[%s1347_s5 + $0x8] sm:$0xff] }
  0x44   :  { %811 = vmatprep.subr.bf16.mxu0 %v1026_v39  ;;  %756 = vmatprep.mubr.msk.f32.mxu0 %vm1027_vm2, %v1025_v0  ;;  %v830_v2 = vpack.c.bf16 %v280_v1, %v279_v63  ;;  %v353_v5 = vld [vmem:[%s1347_s5 + $0x10] sm:$0xff]  ;;  %v833_v6 = vpack.c.bf16 %v352_v4, %v351_v3  ;;  %v354_v7 = vld [vmem:[%s1347_s5 + $0x18] sm:$0xff]  ;;  %v436_v15 = vld [vmem:[#allocation6 + $0x8] sm:$0xff] }
  0x45   :  { %687 = vmatmul.mubr.msk.f32.vlgmr.msra.gmra.mrb[0].mxu1 %vm87_vm0, %v164_v26  ;;  %v836_v8 = vpack.c.bf16 %v354_v7, %v353_v5  ;;  %v435_v14 = vld [vmem:[#allocation6] sm:$0xff]  ;;  %v437_v17 = vld [vmem:[#allocation6 + $0x10] sm:$0xff]  ;;  %v438_v18 = vld [vmem:[#allocation6 + $0x18] sm:$0xff] }
  0x46   :  { %767 = vmatprep.mubr.msk.f32.mxu1 %vm1027_vm2, %v1025_v0  ;;  %834 = vmatpush3.bf16.msra.mxu1 %v833_v6  ;;  %v839_v16 = vpack.c.bf16 %v436_v15, %v435_v14  ;;  %v842_v19 = vpack.c.bf16 %v438_v18, %v437_v17  ;;  %v432_v22 = vld [vmem:[%s1350_s8 + $0x3] sm:$0x1]  ;;  %v542_v44 = vld [vmem:[#allocation8] sm:$0xff]  ;;  %v544_v46 = vld [vmem:[#allocation8 + $0x10] sm:$0xff] }
  0x47   :  { %813 = vmatpush3.bf16.msra.mxu0 %v812_v42  ;;  %835 = vmatprep.subr.bf16.mxu1 %v1026_v39 }
  0x48   :  { %814 = vmatprep.subr.bf16.mxu0 %v1026_v39 }
  0x4a   :  { %837 = vmatpush3.bf16.msra.mxu1 %v836_v8 }
  0x4b   :  { %816 = vmatpush3.bf16.msra.mxu0 %v815_v45  ;;  %838 = vmatprep.subr.bf16.mxu1 %v1026_v39  ;;  %v543_v45 = vld [vmem:[#allocation8 + $0x8] sm:$0xff] }
  0x4c   :  { %817 = vmatprep.subr.bf16.mxu0 %v1026_v39  ;;  %v845_v47 = vpack.c.bf16 %v543_v45, %v542_v44 }
  0x4f   :  { %819 = vmatpush3.bf16.msra.mxu0 %v818_v48  ;;  %v545_v48 = vld [vmem:[#allocation8 + $0x18] sm:$0xff] }
  0x50   :  { %820 = vmatprep.subr.bf16.mxu0 %v1026_v39  ;;  %v848_v49 = vpack.c.bf16 %v545_v48, %v544_v46 }
  0x53   :  { %822 = vmatpush3.bf16.msra.mxu0 %v821_v51 }
  0x54   :  { %823 = vmatprep.subr.bf16.mxu0 %v1026_v39 }
  0x57   :  { %825 = vmatpush3.bf16.msra.mxu0 %v824_v59 }
  0x58   :  { %826 = vmatprep.subr.bf16.mxu0 %v1026_v39 }
  0x5b   :  { %828 = vmatpush3.bf16.msra.mxu0 %v827_v62 }
  0x5c   :  { %829 = vmatprep.subr.bf16.mxu0 %v1026_v39 }
  0x5f   :  { %831 = vmatpush3.bf16.msra.mxu0 %v830_v2 }
 0x115   :  { %v157_v27 = vpop.f32.mrb[0].mxu0 }
 0x116   :  { %162 = vst [vmem:[#allocation2] sm:$0xff] %v157_v27  ;;  %v159_v28 = vpop.f32.mrb[1].mxu0 }
 0x117   :  { %163 = vst [vmem:[#allocation2 + $0x8] sm:$0xff] %v159_v28  ;;  %v512_v28 = vld [vmem:[%s1350_s8 + $0x1] sm:$0x1] }
 0x118   :  { %v244_v29 = vpop.f32.mrb[0].mxu1 }
 0x119   :  { %v1193_v30 = vpop.f32.mrb[1].mxu1 }
 0x11e   :  { %v1195_v31 = vld [vmem:[#allocation2] ss:$8 sm:$0x3] }
 0x11f   :  { %v249_v33 = vadd.f32 %v244_v29, %v1195_v31  ;;  %v429_v20 = vrot.slane %v1195_v31, 1 }
 0x121   :  { %v251_v34 = vadd.f32 %v250_v32, %v249_v33 }
 0x123   :  { %v253_v35 = vsel %vm252_vm1, %v251_v34, -inf }
 0x124   :  { %254 = vmax.xlane.f32.xlu0 %v253_v35 }
 0x1b1   :  { %v255_v52 = vpop.xlane.xlu0 %254 }
 0x1b2   :  { %v256_v53 = vsub.f32 %v251_v34, %v255_v52  ;;  %v165_v34 = vld [vmem:[%s1343_s1 + $0x1] sm:$0x1] }
 0x1b4   :  { %v257_v54 = vmul.f32 1.442695, %v256_v53 }
 0x1b6   :  { %864 = vpow2.f32 %v257_v54  ;;  %v546_v54 = vld [vmem:[%s1350_s8 + $0x2] sm:$0x1]  ;;  %s1031_s8 = smov [#allocation10]  }
 0x1b7   :  { %s659_s25 = sshll.u32 %s1031_s8, 4  ;;  %s660_s25 = int_to_ptr.vmem [resolvable:$true] %s659_s25 }
 0x1b8   :  { %s946_s26 = scalar_lea.vmem %s660_s25, 128  ;;  %p951_p11 = scmp.lt.s32.totalorder %s660_s25, %s660_s25 }
 0x1b9   :  { %p947_p10 = scmp.ne.s32.totalorder %s660_s25, %s946_s26  ;;  %p952_p12 = scmp.lt.s32.totalorder %s946_s26, %s946_s26 }
 0x1bb   :  { %p953_p13 = por %p952_p12, %p951_p11 }
 0x1bd   :  { %p954_p0 = pnand %p953_p13, %p947_p10 }
 0x1c0   :  { %v865_v55 = vpop.eup %864 }
 0x1c1   :  { %v259_v56 = vsel %vm252_vm1, %v865_v55, 0.0 }
 0x1c2   :  { %260 = vadd.xlane.f32.xlu0 %v259_v56 }
 0x24f   :  { %v261_v9 = vpop.xlane.xlu0 %260 }
 0x250   :  { %866 = vrcp.f32 %v261_v9 }
 0x25a   :  { %v867_v10 = vpop.eup %866 }
 0x25b   :  { %v263_v11 = vmul.f32 %v867_v10, %v865_v55 }
 0x25d   :  { %757 = vmatmul.mubr.f32.vlgmr.msra.gmra.mrb[2].mxu0 %v263_v11  ;;  %264 = vst [vmem:[#allocation10] sm:$0x1] %v263_v11 }
 0x330   :  { %v347_v12 = vpop.f32.mrb[2].mxu0 }
 0x331   :  { %v758_v13 = vpop.f32.mrb[3].mxu0  ;;  %768 = vmatmul.mubr.msk.f32.vlgmr.msra.gmra.mrb[2].mxu1 %vm87_vm0, %v347_v12 }
 0x332   :  { %778 = vmatprep.mubr.msk.f32.mxu1 %vm1027_vm2, %v1025_v0  ;;  %840 = vmatpush3.bf16.msra.mxu1 %v839_v16 }
 0x333   :  { %841 = vmatprep.subr.bf16.mxu1 %v1026_v39 }
 0x336   :  { %843 = vmatpush3.bf16.msra.mxu1 %v842_v19 }
 0x337   :  { %844 = vmatprep.subr.bf16.mxu1 %v1026_v39 }
 0x404   :  { %v424_v21 = vpop.f32.mrb[2].mxu1 }
 0x405   :  { %v431_v23 = vadd.f32 %v429_v20, %v424_v21  ;;  %v769_v24 = vpop.f32.mrb[3].mxu1 }
 0x407   :  { %v433_v25 = vadd.f32 %v432_v22, %v431_v23 }
 0x409   :  { %v434_v26 = vmax.f32 %v433_v25, 0.0 }
 0x40b   :  { %779 = vmatmul.mubr.msk.f32.vlgmr.msra.gmra.mrb[4].mxu1 %vm87_vm0, %v434_v26 }
 0x40c   :  { %789 = vmatprep.mubr.msk.f32.mxu1 %vm1027_vm2, %v1025_v0  ;;  %846 = vmatpush3.bf16.msra.mxu1 %v845_v47 }
 0x40d   :  { %847 = vmatprep.subr.bf16.mxu1 %v1026_v39 }
 0x410   :  { %849 = vmatpush3.bf16.msra.mxu1 %v848_v49 }
 0x4de   :  { %v508_v27 = vpop.f32.mrb[4].mxu1 }
 0x4df   :  { %v509_v29 = vadd.f32 %v508_v27, %v1193_v30  ;;  %v780_v31 = vpop.f32.mrb[5].mxu1 }
 0x4e1   :  { %v513_v32 = vadd.f32 %v512_v28, %v509_v29 }
 0x4e3   :  { %868 = vtanh.f32 %v513_v32  ;;  %v690_v0 = vmul.f32 -1.442695, %v513_v32 }
 0x4e5   :  { %870 = vpow2.f32 %v690_v0 }
 0x4ed   :  { %v869_v33 = vpop.eup %868 }
 0x4ee   :  { %527 = vrot.lane.b32.xlu1 %v869_v33, %s1028_s15 }
 0x4ef   :  { %v871_v35 = vpop.eup %870 }
 0x4f0   :  { %v517_v36 = vadd.f32 1.0, %v871_v35 }
 0x4f2   :  { %522 = vrot.lane.b32.xlu1 %v165_v34, %s1029_s18  ;;  %872 = vrcp.f32 %v517_v36 }
 0x4fc   :  { %v873_v37 = vpop.eup %872 }
 0x560   :  { %v528_v38 = vpop.permute.xlu1 %527 }
 0x561   :  { %v530_v30 = vmul.f32 %v873_v37, %v528_v38 }
 0x563   :  { %532 = vrot.lane.b32.xlu0 %v530_v30, %s1029_s18 }
 0x564   :  { %v523_v40 = vpop.permute.xlu1 %522 }
 0x565   :  { %v525_v41 = vmul.f32 %v873_v37, %v523_v40 }
 0x5d5   :  { %v533_v42 = vpop.permute.xlu0 %532 }
 0x5d6   :  { %v535_v43 = vadd.f32 %v533_v42, %v525_v41 }
 0x5d8   :  { %874 = vtanh.f32 %v535_v43 }
 0x5e2   :  { %v875_v50 = vpop.eup %874 }
 0x5e3   :  { %538 = vrot.lane.b32.xlu1 %v875_v50, %s1028_s15 }
 0x655   :  { %v539_v51 = vpop.permute.xlu1 %538 }
 0x656   :  { %v541_v52 = vmul.f32 %v873_v37, %v539_v51 }
 0x658   :  { %548 = vrot.lane.b32.xlu1 %v541_v52, %s1029_s18 }
 0x6ca   :  { %v549_v53 = vpop.permute.xlu1 %548 }
 0x6cb   :  { %637 = vst.msk [vmem:[#allocation12] sm:$0x1] %vm636_vm3, %v549_v53  ;;  %790 = vmatmul.mubr.msk.f32.vlgmr.msra.gmra.mrb[6].mxu1 %vm87_vm0, %v549_v53 }
 0x79e   :  { %v618_v55 = vpop.f32.mrb[6].mxu1 }
 0x79f   :  { %v619_v56 = vadd.f32 %v618_v55, %v546_v54  ;;  %v791_v57 = vpop.f32.mrb[7].mxu1 }
 0x7a1   :  { %v622_v39 = vsel %vm252_vm1, %v619_v56, -inf }
 0x7a2   :  { %623 = vmax.xlane.f32.xlu1 %v622_v39 }
 0x7b3   :  { %639 = vrot.lane.b32.xlu1 %v535_v43, %s1030_s24 }
 0x82f   :  { %v624_v58 = vpop.xlane.xlu1 %623 }
 0x830   :  { %v625_v59 = vsub.f32 %v619_v56, %v624_v58 }
 0x832   :  { %v626_v60 = vmul.f32 1.442695, %v625_v59 }
 0x833   :  { %v640_v61 = vpop.permute.xlu1 %639 }
 0x834   :  { %876 = vpow2.f32 %v626_v60  ;;  %642 = vst.msk [vmem:[#allocation12 + $0x1] sm:$0x1] %vm636_vm3, %v640_v61 }
 0x83e   :  { %v877_v62 = vpop.eup %876 }
 0x83f   :  { %v628_v63 = vsel %vm252_vm1, %v877_v62, 0.0 }
 0x840   :  { %629 = vadd.xlane.f32.xlu0 %v628_v63 }
 0x841   :  { %957 = shalt.err (!%p954_p0)
}
 0x842   :  { %s958_s12 = scalar_lea.hbm %s1352_s10, 128 }
 0x843   :  { %p959_p1 = scmp.ne.s32.totalorder %s1352_s10, %s958_s12  ;;  %p962_p2 = scmp.lt.u32.totalorder %s958_s12, %s1352_s10 }
 0x845   :  { %p964_p3 = pnand %p962_p2, %p959_p1 }
 0x847   :  { %967 = shalt.err (!%p964_p3)
}
 0x848   :  { %662 = dma.vmem_to_hbm [thread:$0]  %s660_s25, 128, %s1352_s10, [#allocation11]  }
 0x849   :  { %s1032_s20 = smov [#allocation12]  }
 0x84a   :  { %s669_s3 = sshll.u32 %s1032_s20, 4  ;;  %s670_s3 = int_to_ptr.vmem [resolvable:$true] %s669_s3 }
 0x84b   :  { %s968_s21 = scalar_lea.vmem %s670_s3, 32  ;;  %p973_p5 = scmp.lt.s32.totalorder %s670_s3, %s670_s3 }
 0x84c   :  { %p969_p4 = scmp.ne.s32.totalorder %s670_s3, %s968_s21  ;;  %p974_p6 = scmp.lt.s32.totalorder %s968_s21, %s968_s21 }
 0x84e   :  { %p975_p7 = por %p974_p6, %p973_p5 }
 0x850   :  { %p976_p8 = pnand %p975_p7, %p969_p4 }
 0x852   :  { %979 = shalt.err (!%p976_p8)
}
 0x853   :  { %s980_s5 = scalar_lea.hbm %s1353_s11, 32 }
 0x854   :  { %p981_p9 = scmp.ne.s32.totalorder %s1353_s11, %s980_s5  ;;  %p984_p10 = scmp.lt.u32.totalorder %s980_s5, %s1353_s11 }
 0x856   :  { %p986_p11 = pnand %p984_p10, %p981_p9 }
 0x858   :  { %989 = shalt.err (!%p986_p11)
}
 0x859   :  { %672 = dma.vmem_to_hbm [thread:$0]  %s670_s3, 32, %s1353_s11, [#allocation11]  }
 0x85a   :  { %s1033_s6 = smov [#allocation9]  }
 0x85b   :  { %s649_s18 = sshll.u32 %s1033_s6, 4  ;;  %s650_s18 = int_to_ptr.vmem [resolvable:$true] %s649_s18 }
 0x85c   :  { %s990_s1 = scalar_lea.vmem %s650_s18, 128  ;;  %p995_p13 = scmp.lt.s32.totalorder %s650_s18, %s650_s18 }
 0x85d   :  { %p991_p12 = scmp.ne.s32.totalorder %s650_s18, %s990_s1  ;;  %p996_p0 = scmp.lt.s32.totalorder %s990_s1, %s990_s1 }
 0x85f   :  { %p997_p1 = por %p996_p0, %p995_p13 }
 0x861   :  { %p998_p2 = pnand %p997_p1, %p991_p12 }
 0x8cd   :  { %v630_v1 = vpop.xlane.xlu0 %629 }
 0x8ce   :  { %878 = vlog2.f32 %v630_v1 }
 0x8d8   :  { %v879_v2 = vpop.eup %878 }
 0x8d9   :  { %v632_v3 = vmul.f32 0.6931472, %v879_v2 }
 0x8db   :  { %v633_v4 = vsub.f32 %v625_v59, %v632_v3 }
 0x8dd   :  { %634 = vst [vmem:[#allocation9] sm:$0x1] %v633_v4 }
 0x8de   :  { %1001 = shalt.err (!%p998_p2)
}
 0x8df   :  { %s1002_s11 = scalar_lea.hbm %s1351_s9, 128 }
 0x8e0   :  { %p1003_p3 = scmp.ne.s32.totalorder %s1351_s9, %s1002_s11  ;;  %p1006_p4 = scmp.lt.u32.totalorder %s1002_s11, %s1351_s9 }
 0x8e2   :  { %p1008_p5 = pnand %p1006_p4, %p1003_p3 }
 0x8e4   :  { %1011 = shalt.err (!%p1008_p5)
}
 0x8e5   :  { %652 = dma.vmem_to_hbm [thread:$0]  %s650_s18, 128, %s1351_s9, [#allocation5]  }
 0x8e6   :  { %1016 = dma.done.wait [#allocation5], 128  }
 0x8e7   :  { %1017 = vsyncadd [#allocation5], 4294967168 }
 0x8e8   :  { %1018 = dma.done.wait [#allocation11], 160  }
 0x8e9   :  { %1019 = vsyncadd [#allocation11], 4294967136 }
 0x8ea   :  { %682 = vsyncpa [#allocation4], 1 }
 0x8eb   :  { %683 = vsyncpa [#allocation7], 1 }
 0x8ec   :  { %684 = vsyncpa [#allocation5], 1 }
 0x8ed   :  { %685 = vsyncpa [#allocation11], 1 }

</bundles_post_ra>
